<compile_context>
chip_gen: v6e
topology: v6e:2x2x1
jax: 0.10.0
libtpu: 0.0.40
codegen_flags: <defaults>
</compile_context>

<pallas_src>
import functools
from typing import NamedTuple

import jax
import jax.numpy as jnp
from jax.experimental import pallas as pl
from jax.experimental.pallas import tpu as pltpu

LANE = 128


def _round_up(x, m):
    return ((x + m - 1) // m) * m


# ------------------------------ static layout --------------------------------
class Dims(NamedTuple):
    dn: int; de: int
    n_src0: int; n_dst0: int; n_edge: int
    n_src0_p: int; n_dst0_p: int; e_pad: int; n_dst1_al: int
    # data slab (bf16) row offsets / shape
    d_adj0: int; d_adj1: int; d_h0: int; d_rows: int; d_cols: int
    # weight slab (bf16, 128 lanes) row offsets / shape
    w_w0s: int; w_w0n: int; w_w1s: int; w_w1n: int
    w_wsrc: int; w_wdst: int; w_wout: int; w_sel: int; w_rows: int


def make_dims(dim_node, dim_embed, n_src0, n_dst0, n_edge):
    ru8 = lambda x: _round_up(x, 8)
    ru16 = lambda x: _round_up(x, 16)   # bf16: 2 rows / sublane -> 16-row sections
    n_src0_p, n_dst0_p, e_pad = ru8(n_src0), ru8(n_dst0), ru8(n_edge)
    n_dst1_al = 3 * e_pad
    d_adj0 = 0
    d_adj1 = d_adj0 + ru16(n_dst0_p)
    d_h0 = d_adj1 + ru16(n_dst1_al)
    d_rows = d_h0 + ru16(n_src0_p)
    d_cols = max(n_src0_p, n_dst0_p, dim_node)
    dn16, de16 = ru16(dim_node), ru16(dim_embed)
    w_w0s = 0
    w_w0n = w_w0s + dn16
    w_w1s = w_w0n + dn16
    w_w1n = w_w1s + de16
    w_wsrc = w_w1n + de16
    w_wdst = w_wsrc + de16
    w_wout = w_wdst + de16
    w_sel = w_wout + de16
    w_rows = w_sel + ru16(n_dst1_al)
    return Dims(dim_node, dim_embed, n_src0, n_dst0, n_edge,
                n_src0_p, n_dst0_p, e_pad, n_dst1_al,
                d_adj0, d_adj1, d_h0, d_rows, d_cols,
                w_w0s, w_w0n, w_w1s, w_w1n, w_wsrc, w_wdst, w_wout, w_sel, w_rows)


# ---------------------------- shared kernel math ------------------------------
def _forward_math(data, w, b, d: Dims):
    """Exact kernel math.  `data`/`w`/`b` may be Pallas Refs (static slices =
    targeted loads) or plain arrays (used by the mirror reference)."""
    f32, bf16 = jnp.float32, jnp.bfloat16
    dn, de = d.dn, d.de

    # ---- carve the packed slabs (16-aligned static row offsets) ----
    adj0 = data[d.d_adj0:d.d_adj0 + d.n_dst0_p, 0:d.n_src0_p]
    adj1 = data[d.d_adj1:d.d_adj1 + d.n_dst1_al, 0:d.n_dst0_p]
    h0 = data[d.d_h0:d.d_h0 + d.n_src0_p, 0:dn]
    w0s = w[d.w_w0s:d.w_w0s + dn, 0:de]
    w0n = w[d.w_w0n:d.w_w0n + dn, 0:de]
    w1s = w[d.w_w1s:d.w_w1s + de, 0:de]
    w1n = w[d.w_w1n:d.w_w1n + de, 0:de]
    wsrc = w[d.w_wsrc:d.w_wsrc + de, 0:de]
    wdst = w[d.w_wdst:d.w_wdst + de, 0:de]
    wout = w[d.w_wout:d.w_wout + de, :]                    # (de, 128) lane-dense
    sel1 = w[d.w_sel:d.w_sel + d.n_dst1_al, 0:d.n_dst0_p]  # 0/1 row selector
    b0 = b[0:1, 0:de]
    b1 = b[1:2, 0:de]
    bsd = b[2:3, 0:de]
    bout = b[3:4, :]

    # ---- layer 0: mean-SAGEConv (two dots + add; no lane concat) ----
    h_neigh0 = jnp.dot(adj0, h0, preferred_element_type=f32)
    z0 = (jnp.dot(h0[:d.n_dst0_p], w0s, preferred_element_type=f32)
          + jnp.dot(h_neigh0.astype(bf16), w0n, preferred_element_type=f32)
          + b0)
    h1 = jnp.maximum(z0, 0.0).astype(bf16)                 # inter-layer ReLU (f32)

    # ---- layer 1: self rows gathered into 8-aligned edge blocks via sel1 ----
    h_self1 = jnp.dot(sel1, h1, preferred_element_type=f32).astype(bf16)
    h_neigh1 = jnp.dot(adj1, h1, preferred_element_type=f32).astype(bf16)
    h2 = (jnp.dot(h_self1, w1s, preferred_element_type=f32)
          + jnp.dot(h_neigh1, w1n, preferred_element_type=f32)
          + b1)                                            # (3*e_pad, de) f32

    # ---- edge predictor: h2 = [src | pos_dst | neg_dst] aligned blocks ----
    src = h2[:d.e_pad].astype(bf16)
    dst = h2[d.e_pad:].astype(bf16)                        # pos block, then neg block
    src_lin = jnp.dot(src, wsrc, preferred_element_type=f32)
    dst_lin = jnp.dot(dst, wdst, preferred_element_type=f32)
    edge = jnp.maximum(
        jnp.concatenate([src_lin, src_lin], axis=0) + dst_lin + bsd, 0.0)
    out = jnp.dot(edge.astype(bf16), wout, preferred_element_type=f32) + bout
    return out                                             # (2*e_pad, 128) f32


def fused_sage_kernel(data_ref, w_ref, b_ref, out_ref, *, d: Dims):
    out_ref[...] = _forward_math(data_ref, w_ref, b_ref, d)


# ------------------------------ wrapper / prep --------------------------------
def prepare_params(params, d: Dims):
    """Pack weights (bf16) and biases (f32) into constant slabs. Call ONCE."""
    f32 = jnp.float32
    p0, p1, ep = params["l0"], params["l1"], params["edge_predictor"]

    def put(slab, off, mat):
        r, c = mat.shape
        return slab.at[off:off + r, :c].set(mat)

    w = jnp.zeros((d.w_rows, LANE), f32)
    w = put(w, d.w_w0s, p0["w_self"])
    w = put(w, d.w_w0n, p0["w_neigh"])
    w = put(w, d.w_w1s, p1["w_self"])
    w = put(w, d.w_w1n, p1["w_neigh"])
    w = put(w, d.w_wsrc, ep["w_src"])
    w = put(w, d.w_wdst, ep["w_dst"])
    w = put(w, d.w_wout, ep["w_out"])
    # 0/1 selector gathering layer-1 dst rows (= first 3E rows of h1) into the
    # 8-aligned [src | pos | neg] block layout (MXU pass instead of XLU shuffle).
    rows = (jnp.arange(3)[:, None] * d.e_pad + jnp.arange(d.n_edge)[None, :]).reshape(-1)
    cols = (jnp.arange(3)[:, None] * d.n_edge + jnp.arange(d.n_edge)[None, :]).reshape(-1)
    sel = jnp.zeros((d.n_dst1_al, d.n_dst0_p), f32).at[rows, cols].set(1.0)
    w = put(w, d.w_sel, sel)

    b = jnp.zeros((8, LANE), f32)
    b = b.at[0, :d.de].set(p0["bias"].reshape(-1))
    b = b.at[1, :d.de].set(p1["bias"].reshape(-1))
    b = b.at[2, :d.de].set((ep["b_src"] + ep["b_dst"]).reshape(-1))   # folded bias
    b = b.at[3, 0].set(ep["b_out"].reshape(-1)[0])
    return w.astype(jnp.bfloat16), b


def build_data_slab(adj0_b, adj1_b, h0_b, d: Dims):
    """Per-step glue: pack B mfgs into one (B, d_rows, d_cols) bf16 slab."""
    B = adj0_b.shape[0]
    data = jnp.zeros((B, d.d_rows, d.d_cols), jnp.float32)
    data = data.at[:, d.d_adj0:d.d_adj0 + d.n_dst0, :d.n_src0].set(adj0_b)
    # scatter adj1's [src|pos|neg] row blocks to 8-aligned starts
    a1 = adj1_b.reshape(B, 3, d.n_edge, d.n_dst0)
    a1 = jnp.pad(a1, ((0, 0), (0, 0), (0, d.e_pad - d.n_edge), (0, 0)))
    a1 = a1.reshape(B, d.n_dst1_al, d.n_dst0)
    data = data.at[:, d.d_adj1:d.d_adj1 + d.n_dst1_al, :d.n_dst0].set(a1)
    data = data.at[:, d.d_h0:d.d_h0 + d.n_src0, :d.dn].set(h0_b)
    return data.astype(jnp.bfloat16)


def sage_batched_forward(adj0_b, adj1_b, h0_b, w_slab, b_slab, *, d: Dims):
    data = build_data_slab(adj0_b, adj1_b, h0_b, d)
    B = data.shape[0]
    out = pl.pallas_call(
        functools.partial(fused_sage_kernel, d=d),
        out_shape=jax.ShapeDtypeStruct((B, 2 * d.e_pad, LANE), jnp.float32),
        grid=(B,),
        in_specs=[
            pl.BlockSpec((None, d.d_rows, d.d_cols), lambda i: (i, 0, 0)),
            pl.BlockSpec((d.w_rows, LANE), lambda i: (0, 0)),   # constant slab
            pl.BlockSpec((8, LANE), lambda i: (0, 0)),          # constant slab
        ],
        out_specs=pl.BlockSpec((None, 2 * d.e_pad, LANE), lambda i: (i, 0, 0)),
        compiler_params=pltpu.CompilerParams(
            dimension_semantics=("parallel",)),                 # v7x megacore split
    )(data, w_slab, b_slab)
    pos = out[:, :d.n_edge, 0:1]
    neg = out[:, d.e_pad:d.e_pad + d.n_edge, 0:1]
    return pos, neg


# -------------------------------- references ----------------------------------
def sage_forward_mirror_ref(adj0_b, adj1_b, h0_b, w_slab, b_slab, d: Dims):
    """Plain-JAX run of the exact kernel math (same packing / bf16 recipe)."""
    data = build_data_slab(adj0_b, adj1_b, h0_b, d)
    out = jax.vmap(lambda x: _forward_math(x, w_slab, b_slab, d))(data)
    return out[:, :d.n_edge, 0:1], out[:, d.e_pad:d.e_pad + d.n_edge, 0:1]


def sage_edge_pred_ref_f32(adj0, adj1, h0, params):
    """Full-f32 reference of the module semantics for one mfg stack."""
    p0, p1, ep = params["l0"], params["l1"], params["edge_predictor"]
    n_dst0, n_dst1 = adj0.shape[0], adj1.shape[0]
    e = n_dst1 // 3
    h1 = jnp.maximum(
        h0[:n_dst0] @ p0["w_self"] + (adj0 @ h0) @ p0["w_neigh"] + p0["bias"], 0.0)
    h2 = h1[:n_dst1] @ p1["w_self"] + (adj1 @ h1) @ p1["w_neigh"] + p1["bias"]
    h_src = h2[:e] @ ep["w_src"] + ep["b_src"]
    h_pos = h2[e:2 * e] @ ep["w_dst"] + ep["b_dst"]
    h_neg = h2[2 * e:] @ ep["w_dst"] + ep["b_dst"]
    pos = jnp.maximum(h_src + h_pos, 0.0) @ ep["w_out"] + ep["b_out"]
    neg = jnp.maximum(h_src + h_neg, 0.0) @ ep["w_out"] + ep["b_out"]
    return pos, neg


def make_norm_adj(key, n_dst, n_src):
    """Random graph -> row-normalized dense adjacency ('mean' aggregation)."""
    a = (jax.random.uniform(key, (n_dst, n_src)) < 0.3).astype(jnp.float32)
    deg = jnp.clip(a.sum(axis=1, keepdims=True), 1.0, None)
    return a / deg


# ----------------------------------- main --------------------------------------
if __name__ == "__main__":
    dim_node, dim_embed = 16, 32
    # per-mfg DGL block sizes: layer0 src=32 dst=20, layer1 dst = 3 * 4 edges
    n_src0, n_dst0, n_edge = 32, 20, 4
    batch = 4                                   # mfgs processed per pallas_call

    d = make_dims(dim_node, dim_embed, n_src0, n_dst0, n_edge)

    key = jax.random.PRNGKey(0)
    keys = jax.random.split(key, 16)

    # batch of sampled mfgs (glue, built in plain JAX)
    adj0_b = jnp.stack([make_norm_adj(k, n_dst0, n_src0)
                        for k in jax.random.split(keys[0], batch)])
    adj1_b = jnp.stack([make_norm_adj(k, 3 * n_edge, n_dst0)
                        for k in jax.random.split(keys[1], batch)])
    h0_b = jax.random.normal(keys[2], (batch, n_src0, dim_node), jnp.float32)

    # deterministic parameter init (weights stored as (in, out); y = x @ W + b)
    def lin(k, d_in, d_out):
        return jax.random.normal(k, (d_in, d_out), jnp.float32) * (1.0 / d_in ** 0.5)

    params = {
        "l0": {
            "w_neigh": lin(keys[3], dim_node, dim_embed),
            "w_self": lin(keys[4], dim_node, dim_embed),
            "bias": jnp.zeros((1, dim_embed), jnp.float32),
        },
        "l1": {
            "w_neigh": lin(keys[5], dim_embed, dim_embed),
            "w_self": lin(keys[6], dim_embed, dim_embed),
            "bias": jnp.zeros((1, dim_embed), jnp.float32),
        },
        "edge_predictor": {
            "w_src": lin(keys[7], dim_embed, dim_embed),
            "b_src": jax.random.normal(keys[8], (1, dim_embed), jnp.float32) * 0.01,
            "w_dst": lin(keys[9], dim_embed, dim_embed),
            "b_dst": jax.random.normal(keys[10], (1, dim_embed), jnp.float32) * 0.01,
            "w_out": lin(keys[11], dim_embed, 1),
            "b_out": jax.random.normal(keys[12], (1, 1), jnp.float32) * 0.01,
        },
    }

    # params packed ONCE (hoisted out of the per-call path, per perf review)
    w_slab, b_slab = prepare_params(params, d)

    fwd = jax.jit(functools.partial(sage_batched_forward, d=d))
    pos, neg = jax.block_until_ready(fwd(adj0_b, adj1_b, h0_b, w_slab, b_slab))

    # tight check: exact-math mirror (same packing / bf16 / f32-acc recipe)
    pos_m, neg_m = sage_forward_mirror_ref(adj0_b, adj1_b, h0_b, w_slab, b_slab, d)
    assert jnp.allclose(pos, pos_m, atol=2e-3, rtol=2e-3)
    assert jnp.allclose(neg, neg_m, atol=2e-3, rtol=2e-3)

    # loose check: full-f32 module semantics (bf16 MXU inputs)
    pos_f, neg_f = jax.vmap(
        lambda a0, a1, h: sage_edge_pred_ref_f32(a0, a1, h, params))(adj0_b, adj1_b, h0_b)
    assert jnp.allclose(pos, pos_f, atol=2.5e-1, rtol=5e-2)
    assert jnp.allclose(neg, neg_f, atol=2.5e-1, rtol=5e-2)

    print("KERNEL_OK")
</pallas_src>

<mosaic_0001>
module attributes {stable_mosaic.version = 11 : i64} {
  func.func @fused_sage_kernel(%arg0: i32, %arg1: memref<1x96x32xbf16, #tpu.memory_space<vmem>>, %arg2: memref<224x128xbf16, #tpu.memory_space<vmem>>, %arg3: memref<8x128xf32, #tpu.memory_space<vmem>>, %arg4: memref<1x16x128xf32, #tpu.memory_space<vmem>>) attributes {dimension_semantics = [#tpu.dimension_semantics<parallel>], iteration_bounds = array<i64: 4>, scalar_prefetch = 0 : i64, scratch_operands = 0 : i64, tpu.core_type = #tpu.core_type<tc>, window_params = [{transform_indices = @transform_0, window_bounds = array<i64: 1, 96, 32>}, {pipeline_mode = #tpu.pipeline_mode<synchronous>, transform_indices = @transform_1, window_bounds = array<i64: 224, 128>}, {pipeline_mode = #tpu.pipeline_mode<synchronous>, transform_indices = @transform_2, window_bounds = array<i64: 8, 128>}, {transform_indices = @transform_3, window_bounds = array<i64: 1, 16, 128>}]} {
    %c0 = arith.constant 0 : index
    %c0_0 = arith.constant 0 : index
    %c0_1 = arith.constant 0 : index
    %0 = vector.load %arg1[%c0, %c0_0, %c0_1] : memref<1x96x32xbf16, #tpu.memory_space<vmem>>, vector<1x24x32xbf16>
    %1 = vector.shape_cast %0 : vector<1x24x32xbf16> to vector<24x32xbf16>
    %c0_2 = arith.constant 0 : index
    %c32 = arith.constant 32 : index
    %c0_3 = arith.constant 0 : index
    %2 = vector.load %arg1[%c0_2, %c32, %c0_3] : memref<1x96x32xbf16, #tpu.memory_space<vmem>>, vector<1x24x24xbf16>
    %3 = vector.shape_cast %2 : vector<1x24x24xbf16> to vector<24x24xbf16>
    %c0_4 = arith.constant 0 : index
    %c64 = arith.constant 64 : index
    %c0_5 = arith.constant 0 : index
    %4 = vector.load %arg1[%c0_4, %c64, %c0_5] : memref<1x96x32xbf16, #tpu.memory_space<vmem>>, vector<1x32x16xbf16>
    %5 = vector.shape_cast %4 : vector<1x32x16xbf16> to vector<32x16xbf16>
    %c0_6 = arith.constant 0 : index
    %c0_7 = arith.constant 0 : index
    %6 = vector.load %arg2[%c0_6, %c0_7] : memref<224x128xbf16, #tpu.memory_space<vmem>>, vector<16x32xbf16>
    %c16 = arith.constant 16 : index
    %c0_8 = arith.constant 0 : index
    %7 = vector.load %arg2[%c16, %c0_8] : memref<224x128xbf16, #tpu.memory_space<vmem>>, vector<16x32xbf16>
    %c32_9 = arith.constant 32 : index
    %c0_10 = arith.constant 0 : index
    %8 = vector.load %arg2[%c32_9, %c0_10] : memref<224x128xbf16, #tpu.memory_space<vmem>>, vector<32x32xbf16>
    %c64_11 = arith.constant 64 : index
    %c0_12 = arith.constant 0 : index
    %9 = vector.load %arg2[%c64_11, %c0_12] : memref<224x128xbf16, #tpu.memory_space<vmem>>, vector<32x32xbf16>
    %c96 = arith.constant 96 : index
    %c0_13 = arith.constant 0 : index
    %10 = vector.load %arg2[%c96, %c0_13] : memref<224x128xbf16, #tpu.memory_space<vmem>>, vector<32x32xbf16>
    %c128 = arith.constant 128 : index
    %c0_14 = arith.constant 0 : index
    %11 = vector.load %arg2[%c128, %c0_14] : memref<224x128xbf16, #tpu.memory_space<vmem>>, vector<32x32xbf16>
    %c160 = arith.constant 160 : index
    %c0_15 = arith.constant 0 : index
    %12 = vector.load %arg2[%c160, %c0_15] : memref<224x128xbf16, #tpu.memory_space<vmem>>, vector<32x128xbf16>
    %c192 = arith.constant 192 : index
    %c0_16 = arith.constant 0 : index
    %13 = vector.load %arg2[%c192, %c0_16] : memref<224x128xbf16, #tpu.memory_space<vmem>>, vector<24x24xbf16>
    %c0_17 = arith.constant 0 : index
    %c0_18 = arith.constant 0 : index
    %14 = vector.load %arg3[%c0_17, %c0_18] : memref<8x128xf32, #tpu.memory_space<vmem>>, vector<1x32xf32>
    %c1 = arith.constant 1 : index
    %c0_19 = arith.constant 0 : index
    %15 = vector.load %arg3[%c1, %c0_19] : memref<8x128xf32, #tpu.memory_space<vmem>>, vector<1x32xf32>
    %c2 = arith.constant 2 : index
    %c0_20 = arith.constant 0 : index
    %16 = vector.load %arg3[%c2, %c0_20] : memref<8x128xf32, #tpu.memory_space<vmem>>, vector<1x32xf32>
    %c3 = arith.constant 3 : index
    %c0_21 = arith.constant 0 : index
    %17 = vector.load %arg3[%c3, %c0_21] : memref<8x128xf32, #tpu.memory_space<vmem>>, vector<1x128xf32>
    %cst = arith.constant dense<0.000000e+00> : vector<24x16xf32>
    %18 = tpu.matmul %1, %5, %cst {dimension_numbers = #tpu.dot_dimension_numbers<[1], [0], [0], [1], [0, 0, 1, 1], [], []>} : vector<24x32xbf16>, vector<32x16xbf16>, vector<24x16xf32> -> vector<24x16xf32>
    %19 = vector.extract_strided_slice %5 {offsets = [0, 0], sizes = [24, 16], strides = [1, 1]} : vector<32x16xbf16> to vector<24x16xbf16>
    %cst_22 = arith.constant dense<0.000000e+00> : vector<24x32xf32>
    %20 = tpu.matmul %19, %6, %cst_22 {dimension_numbers = #tpu.dot_dimension_numbers<[1], [0], [0], [1], [0, 0, 1, 1], [], []>} : vector<24x16xbf16>, vector<16x32xbf16>, vector<24x32xf32> -> vector<24x32xf32>
    %21 = arith.truncf %18 : vector<24x16xf32> to vector<24x16xbf16>
    %cst_23 = arith.constant dense<0.000000e+00> : vector<24x32xf32>
    %22 = tpu.matmul %21, %7, %cst_23 {dimension_numbers = #tpu.dot_dimension_numbers<[1], [0], [0], [1], [0, 0, 1, 1], [], []>} : vector<24x16xbf16>, vector<16x32xbf16>, vector<24x32xf32> -> vector<24x32xf32>
    %23 = arith.addf %20, %22 : vector<24x32xf32>
    %24 = vector.broadcast %14 : vector<1x32xf32> to vector<24x32xf32>
    %25 = arith.addf %23, %24 : vector<24x32xf32>
    %cst_24 = arith.constant 0.000000e+00 : f32
    %26 = vector.broadcast %cst_24 : f32 to vector<24x32xf32>
    %27 = arith.maximumf %25, %26 : vector<24x32xf32>
    %28 = arith.truncf %27 : vector<24x32xf32> to vector<24x32xbf16>
    %cst_25 = arith.constant dense<0.000000e+00> : vector<24x32xf32>
    %29 = tpu.matmul %13, %28, %cst_25 {dimension_numbers = #tpu.dot_dimension_numbers<[1], [0], [0], [1], [0, 0, 1, 1], [], []>} : vector<24x24xbf16>, vector<24x32xbf16>, vector<24x32xf32> -> vector<24x32xf32>
    %30 = arith.truncf %29 : vector<24x32xf32> to vector<24x32xbf16>
    %cst_26 = arith.constant dense<0.000000e+00> : vector<24x32xf32>
    %31 = tpu.matmul %3, %28, %cst_26 {dimension_numbers = #tpu.dot_dimension_numbers<[1], [0], [0], [1], [0, 0, 1, 1], [], []>} : vector<24x24xbf16>, vector<24x32xbf16>, vector<24x32xf32> -> vector<24x32xf32>
    %32 = arith.truncf %31 : vector<24x32xf32> to vector<24x32xbf16>
    %cst_27 = arith.constant dense<0.000000e+00> : vector<24x32xf32>
    %33 = tpu.matmul %30, %8, %cst_27 {dimension_numbers = #tpu.dot_dimension_numbers<[1], [0], [0], [1], [0, 0, 1, 1], [], []>} : vector<24x32xbf16>, vector<32x32xbf16>, vector<24x32xf32> -> vector<24x32xf32>
    %cst_28 = arith.constant dense<0.000000e+00> : vector<24x32xf32>
    %34 = tpu.matmul %32, %9, %cst_28 {dimension_numbers = #tpu.dot_dimension_numbers<[1], [0], [0], [1], [0, 0, 1, 1], [], []>} : vector<24x32xbf16>, vector<32x32xbf16>, vector<24x32xf32> -> vector<24x32xf32>
    %35 = arith.addf %33, %34 : vector<24x32xf32>
    %36 = vector.broadcast %15 : vector<1x32xf32> to vector<24x32xf32>
    %37 = arith.addf %35, %36 : vector<24x32xf32>
    %38 = vector.extract_strided_slice %37 {offsets = [0, 0], sizes = [8, 32], strides = [1, 1]} : vector<24x32xf32> to vector<8x32xf32>
    %39 = arith.truncf %38 : vector<8x32xf32> to vector<8x32xbf16>
    %40 = vector.extract_strided_slice %37 {offsets = [8, 0], sizes = [16, 32], strides = [1, 1]} : vector<24x32xf32> to vector<16x32xf32>
    %41 = arith.truncf %40 : vector<16x32xf32> to vector<16x32xbf16>
    %cst_29 = arith.constant dense<0.000000e+00> : vector<8x32xf32>
    %42 = tpu.matmul %39, %10, %cst_29 {dimension_numbers = #tpu.dot_dimension_numbers<[1], [0], [0], [1], [0, 0, 1, 1], [], []>} : vector<8x32xbf16>, vector<32x32xbf16>, vector<8x32xf32> -> vector<8x32xf32>
    %cst_30 = arith.constant dense<0.000000e+00> : vector<16x32xf32>
    %43 = tpu.matmul %41, %11, %cst_30 {dimension_numbers = #tpu.dot_dimension_numbers<[1], [0], [0], [1], [0, 0, 1, 1], [], []>} : vector<16x32xbf16>, vector<32x32xbf16>, vector<16x32xf32> -> vector<16x32xf32>
    %44 = tpu.concatenate %42, %42 in 0 : vector<8x32xf32>, vector<8x32xf32> -> vector<16x32xf32>
    %45 = arith.addf %44, %43 : vector<16x32xf32>
    %46 = vector.broadcast %16 : vector<1x32xf32> to vector<16x32xf32>
    %47 = arith.addf %45, %46 : vector<16x32xf32>
    %cst_31 = arith.constant 0.000000e+00 : f32
    %48 = vector.broadcast %cst_31 : f32 to vector<16x32xf32>
    %49 = arith.maximumf %47, %48 : vector<16x32xf32>
    %50 = arith.truncf %49 : vector<16x32xf32> to vector<16x32xbf16>
    %cst_32 = arith.constant dense<0.000000e+00> : vector<16x128xf32>
    %51 = tpu.matmul %50, %12, %cst_32 {dimension_numbers = #tpu.dot_dimension_numbers<[1], [0], [0], [1], [0, 0, 1, 1], [], []>} : vector<16x32xbf16>, vector<32x128xbf16>, vector<16x128xf32> -> vector<16x128xf32>
    %52 = vector.broadcast %17 : vector<1x128xf32> to vector<16x128xf32>
    %53 = arith.addf %51, %52 : vector<16x128xf32>
    %c0_33 = arith.constant 0 : index
    %c0_34 = arith.constant 0 : index
    %c0_35 = arith.constant 0 : index
    %54 = vector.load %arg4[%c0_33, %c0_34, %c0_35] : memref<1x16x128xf32, #tpu.memory_space<vmem>>, vector<1x16x128xf32>
    %55 = vector.shape_cast %54 : vector<1x16x128xf32> to vector<16x128xf32>
    %56 = vector.shape_cast %53 : vector<16x128xf32> to vector<1x16x128xf32>
    tpu.vector_store %arg4[%c0_33, %c0_34, %c0_35], %56 {strides = array<i32>} : memref<1x16x128xf32, #tpu.memory_space<vmem>>, vector<1x16x128xf32>,
    return
  }
  func.func @transform_0(%arg0: i32) -> (i32, i32, i32) {
    %c0_i32 = arith.constant 0 : i32
    %c0_i32_0 = arith.constant 0 : i32
    %c0_i32_1 = arith.constant 0 : i32
    return %arg0, %c0_i32, %c0_i32_0 : i32, i32, i32
  }
  func.func @transform_1(%arg0: i32) -> (i32, i32) {
    %c0_i32 = arith.constant 0 : i32
    %c0_i32_0 = arith.constant 0 : i32
    %c0_i32_1 = arith.constant 0 : i32
    return %c0_i32, %c0_i32_0 : i32, i32
  }
  func.func @transform_2(%arg0: i32) -> (i32, i32) {
    %c0_i32 = arith.constant 0 : i32
    %c0_i32_0 = arith.constant 0 : i32
    %c0_i32_1 = arith.constant 0 : i32
    return %c0_i32, %c0_i32_0 : i32, i32
  }
  func.func @transform_3(%arg0: i32) -> (i32, i32, i32) {
    %c0_i32 = arith.constant 0 : i32
    %c0_i32_0 = arith.constant 0 : i32
    %c0_i32_1 = arith.constant 0 : i32
    return %arg0, %c0_i32, %c0_i32_0 : i32, i32, i32
  }
}

</mosaic_0001>

<bundles_post_ra>
// kernel: sage_batched_forward.1
= control target key start
LH: loop header
LB: loop body
LE: loop exit
PB: predicated region body
PF: predicated region fallthrough
CT: control target
= control target key end

     0   :  { %s1165_s12 = smov 0   ;;  %s1265_s0 = inlined_call_operand.vmem [shape: bf16[4,96,32], index: 0, kind: input, shape index: {}]   ;;  %s1266_s1 = inlined_call_operand.vmem [shape: bf16[224,128], index: 1, kind: input, shape index: {}]   ;;  %s1267_s2 = inlined_call_operand.vmem [shape: f32[8,128], index: 2, kind: input, shape index: {}]   ;;  %s1268_s3 = inlined_call_operand.vmem [shape: f32[4,16,128], index: 3, kind: output, shape index: {}]  }
   0x1 LB: > { %s937_s13 = sadd.s32 4294967295, %s1141_s12   ;;  %p941_p0 = scmp.ge.s32.totalorder %s1141_s12, 1  ;;  %s1141_s12 = sphi %s1165_s12, %s13_s12  }
   0x2   : > { %p137_p1 = scmp.lt.s32.totalorder %s1141_s12, 5 }
   0x4   : > { %p138_p2 = pnand %p941_p0, %p137_p1 }
   0x5   : > { %p161_p3 = scmp.lt.s32.totalorder (!%p138_p2), %s937_s13, 3 }
   0x6   : > { %141 = sbr.rel (%p138_p2) target bundleno = 1259 (0x4eb), region = 32 }
   0xb   : > { %s1270_s13 = smov (!%p161_p3, %s937_s13), 3  ;;  %vm233_vm0 = vcmask 261120   ;;  %v1119_v6 = vld [vmem:[%s1266_s1 + $0x8] sm:$0xff]   ;;  %v1120_v7 = vld [vmem:[%s1266_s1] sm:$0xff]   ;;  %vm296_vm1 = vcmask 130048   ;;  %vm432_vm2 = vcmask 195584  }
   0xc   : > { %s1103_s14 = smul.u32 48, %s1270_s13  ;;  %1033 = vmatprep.subr.bf16.mxu1 %v1119_v6  ;;  %v1121_v15 = vld [vmem:[%s1266_s1 + $0x60] sm:$0xff]   ;;  %vm439_vm3 = vcmask 1043456   ;;  %v1123_v38 = vld [vmem:[%s1266_s1 + $0x68] ss:$0 sps:$4 sm:$0xff]   ;;  %v1126_v41 = vld [vmem:[%s1266_s1 + $0x18] sm:$0xff]  }
   0xd   : > { %1034 = vmatpush3.bf16.msra.mxu1 %v1119_v6  ;;  %v958_v21 = vld [vmem:[%s1267_s2] ss:$0 sm:$0xff]  ;;  %v1125_v40 = vld [vmem:[%s1266_s1 + $0x28] sm:$0xff]   ;;  %v1128_v43 = vld [vmem:[%s1266_s1 + $0x10] sm:$0xff]   ;;  %v1143_v57 = vmov 0.0   ;;  %vm1144_vm4 = vmmov 0  }
   0xe   : > { %s1179_s17 = scalar_lea.vmem %s1265_s0, %s1103_s14  ;;  %1039 = vmatprep.subr.bf16.mxu1 %v1120_v7  ;;  %v1127_v42 = vld [vmem:[%s1266_s1 + $0x20] sm:$0xff]   ;;  %v1129_v56 = vld [vmem:[%s1266_s1 + $0x38] sm:$0xff]   ;;  %v1130_v58 = vld [vmem:[%s1266_s1 + $0x30] sm:$0xff]   ;;  %s989_s27 = sshll.u32 %s1270_s13, 4 }
   0xf   : > { %v180_v0 = vld [vmem:[%s1179_s17 + $0x28] sm:$0xf]  ;;  %v181_v1 = vld [vmem:[%s1179_s17 + $0x2c] sm:$0xf]  ;;  %v1116_v3 = vld [vmem:[%s1179_s17 + $0x20] sm:$0xff]   ;;  %s170_s5 = scalar_lea.vmem %s1268_s3, %s989_s27 }
  0x10   : > { %v948_v2 = vcombine.low %v180_v0, %v181_v1  ;;  %v1117_v4 = vld [vmem:[%s1179_s17] sm:$0xff]   ;;  %v1118_v5 = vld [vmem:[%s1179_s17 + $0x8] ss:$0 sps:$4 sm:$0xff]   ;;  %v954_v14 = vcombine.low %v180_v0, %v180_v0  ;;  %v1122_v16 = vld [vmem:[%s1179_s17 + $0x10] sm:$0xff]  }
  0x11   : > { %1029 = vmatprep.mubr.msk.bf16.mxu0 %vm233_vm0, %v1117_v4  ;;  %v1124_v39 = vld [vmem:[%s1179_s17 + $0x18] ss:$0 sps:$4 sm:$0xff]   ;;  %v1131_v59 = vld [vmem:[%s1266_s1 + $0x48] sm:$0xff]   ;;  %v1132_v60 = vld [vmem:[%s1266_s1 + $0x40] sm:$0xff]  }
  0x12   : > { %1025 = vmatprep.subr.bf16.mxu0 %v948_v2 }
  0x13   : > { %1026 = vmatpush3.bf16.msra.mxu0 %v948_v2  ;;  %v975_v2 = vld [vmem:[%s1267_s2 + $0x1] ss:$0 sm:$0xff] }
  0x14   : > { %1027 = vmatprep.subr.bf16.mxu0 %v1116_v3 }
  0x17   : > { %1028 = vmatpush3.bf16.msra.mxu0 %v1116_v3 }
  0x1a   : > { %1030 = vmatmul.mubr.msk.bf16.vlgmr.msra.gmra.mxu0 %vm233_vm0, %v1118_v5 }
  0x1b   : > { %1049 = vmatprep.mubr.msk.bf16.mxu0 %vm432_vm2, %v1121_v15  ;;  %v1134_v15 = vld [vmem:[%s1266_s1 + $0x50] sm:$0xff]  }
  0xda   : > { %v1031_v8 = vpop.f32.mrf.mxu0 }
  0xdb   : > { %v289_v13 = vpack.c.bf16 %v1031_v8, %v1031_v8 }
  0xdc   : > { %v274_v9 = vpop.f32.mrf.mxu0 }
  0xde   : > { %v1032_v10 = vpop.f32.mrf.mxu0 }
  0xe0   : > { %v277_v11 = vpop.f32.mrf.mxu0 }
  0xe1   : > { %v288_v12 = vpack.c.bf16 %v277_v11, %v274_v9 }
  0xe3   : > { %1035 = vmatprep.mubr.msk.bf16.mxu1 %vm296_vm1, %v288_v12 }
  0xe4   : > { %1036 = vmatmul.mubr.msk.bf16.vlgmr.msra.gmra.mxu1 %vm296_vm1, %v289_v13 }
  0xe5   : > { %1040 = vmatpush3.bf16.msra.mxu1 %v1120_v7  ;;  %1041 = vmatprep.mubr.msk.bf16.mxu1 %vm296_vm1, %v1116_v3 }
  0xec   : > { %1042 = vmatmul.mubr.msk.bf16.vlgmr.msra.gmra.mxu1 %vm296_vm1, %v954_v14  ;;  %v1133_v14 = vld [vmem:[%s1266_s1 + $0x58] sm:$0xff]  }
  0xed   : > { %1057 = vmatprep.mubr.msk.bf16.mxu1 %vm432_vm2, %v1122_v16 }
 0x1a4   : > { %v1037_v17 = vpop.f32.mrf.mxu1 }
 0x1a6   : > { %v337_v18 = vpop.f32.mrf.mxu1 }
 0x1a8   : > { %v1038_v19 = vpop.f32.mrf.mxu1 }
 0x1aa   : > { %v340_v20 = vpop.f32.mrf.mxu1 }
 0x1ac   : > { %v1043_v22 = vpop.f32.mrf.mxu1 }
 0x1ad   : > { %v407_v23 = vadd.f32 %v1043_v22, %v1037_v17 }
 0x1ae   : > { %v398_v24 = vpop.f32.mrf.mxu1 }
 0x1af   : > { %v418_v25 = vadd.f32 %v958_v21, %v407_v23  ;;  %v399_v26 = vadd.f32 %v398_v24, %v337_v18 }
 0x1b0   : > { %v1044_v27 = vpop.f32.mrf.mxu1 }
 0x1b1   : > { %v421_v28 = vmax.f32 %v418_v25, 0.0  ;;  %v416_v31 = vadd.f32 %v958_v21, %v399_v26 }
 0x1b2   : > { %v401_v29 = vpop.f32.mrf.mxu1 }
 0x1b3   : > { %v423_v30 = vpack.c.bf16 %v421_v28, %v421_v28  ;;  %v402_v32 = vadd.f32 %v401_v29, %v340_v20  ;;  %v419_v35 = vmax.f32 %v416_v31, 0.0 }
 0x1b5   : > { %v417_v33 = vadd.f32 %v958_v21, %v402_v32  ;;  %1101 = vmatprep.subr.msk.bf16.mxu0 %vm439_vm3, %v423_v30  ;;  %1102 = vmatprep.subr.msk.bf16.mxu1 %vm439_vm3, %v423_v30  ;;  %v441_v34 = vsel %vm439_vm3, %v423_v30, 0  ;;  %v982_v21 = vld [vmem:[%s1267_s2 + $0x2] ss:$0 sm:$0xff]  ;;  %v983_v32 = vld [vmem:[%s1267_s2 + $0x3] ss:$0 sm:$0xff] }
 0x1b6   : > { %1046 = vmatpush3.bf16.msra.mxu0 %v441_v34  ;;  %1054 = vmatpush3.bf16.msra.mxu1 %v441_v34 }
 0x1b7   : > { %v420_v36 = vmax.f32 %v417_v33, 0.0 }
 0x1b9   : > { %v422_v37 = vpack.c.bf16 %v420_v36, %v419_v35 }
 0x1bb   : > { %1047 = vmatprep.subr.bf16.mxu0 %v422_v37  ;;  %1055 = vmatprep.subr.bf16.mxu1 %v422_v37 }
 0x1bc   : > { %1048 = vmatpush3.bf16.msra.mxu0 %v422_v37  ;;  %1056 = vmatpush3.bf16.msra.mxu1 %v422_v37 }
 0x1bd   : > { %1061 = vmatprep.subr.bf16.mxu0 %v1125_v40  ;;  %1069 = vmatprep.subr.bf16.mxu1 %v1126_v41 }
 0x1bf   : > { %1050 = vmatmul.mubr.msk.bf16.vlgmr.msra.gmra.mxu0 %vm432_vm2, %v1123_v38  ;;  %1058 = vmatmul.mubr.msk.bf16.vlgmr.msra.gmra.mxu1 %vm432_vm2, %v1124_v39 }
 0x1c0   : > { %1062 = vmatpush3.bf16.msra.mxu0 %v1125_v40  ;;  %1070 = vmatpush3.bf16.msra.mxu1 %v1126_v41 }
 0x1c1   : > { %1063 = vmatprep.subr.bf16.mxu0 %v1127_v42  ;;  %1071 = vmatprep.subr.bf16.mxu1 %v1128_v43 }
 0x1c4   : > { %1064 = vmatpush3.bf16.msra.mxu0 %v1127_v42  ;;  %1072 = vmatpush3.bf16.msra.mxu1 %v1128_v43 }
 0x1c5   : > { %1077 = vmatprep.subr.bf16.mxu0 %v1143_v57  ;;  %1085 = vmatprep.subr.bf16.mxu1 %v1143_v57 }
 0x27f   : > { %v1051_v44 = vpop.f32.mrf.mxu0  ;;  %v1059_v45 = vpop.f32.mrf.mxu1 }
 0x280   : > { %v492_v54 = vpack.c.bf16 %v1051_v44, %v1051_v44  ;;  %v556_v55 = vpack.c.bf16 %v1059_v45, %v1059_v45 }
 0x281   : > { %v477_v46 = vpop.f32.mrf.mxu0  ;;  %v541_v47 = vpop.f32.mrf.mxu1 }
 0x283   : > { %v1052_v48 = vpop.f32.mrf.mxu0  ;;  %v1060_v49 = vpop.f32.mrf.mxu1 }
 0x285   : > { %v480_v50 = vpop.f32.mrf.mxu0  ;;  %v544_v51 = vpop.f32.mrf.mxu1 }
 0x286   : > { %v491_v52 = vpack.c.bf16 %v480_v50, %v477_v46  ;;  %v555_v53 = vpack.c.bf16 %v544_v51, %v541_v47 }
 0x288   : > { %1065 = vmatprep.mubr.msk.bf16.mxu0 %vm233_vm0, %v555_v53  ;;  %1073 = vmatprep.mubr.msk.bf16.mxu1 %vm233_vm0, %v491_v52 }
 0x289   : > { %1066 = vmatmul.mubr.msk.bf16.vlgmr.msra.gmra.mxu0 %vm233_vm0, %v556_v55  ;;  %1074 = vmatmul.mubr.msk.bf16.vlgmr.msra.gmra.mxu1 %vm233_vm0, %v492_v54 }
 0x28a   : > { %1078 = vmatpush3.bf16.msra.mxu0 %v1129_v56  ;;  %1086 = vmatpush3.bf16.msra.mxu1 %v1131_v59 }
 0x28b   : > { %1079 = vmatprep.subr.bf16.mxu0 %v1143_v57  ;;  %1087 = vmatprep.subr.bf16.mxu1 %v1143_v57 }
 0x28c   : > { %1081 = vmatprep.mubr.msk.bf16.mxu0 %vm1144_vm4, %v1143_v57  ;;  %1089 = vmatprep.mubr.msk.bf16.mxu1 %vm1144_vm4, %v1143_v57 }
 0x28e   : > { %1080 = vmatpush3.bf16.msra.mxu0 %v1130_v58  ;;  %1088 = vmatpush3.bf16.msra.mxu1 %v1132_v60 }
 0x28f   : > { %1093 = vmatprep.subr.bf16.mxu0 %v1143_v57 }
 0x349   : > { %v1067_v61 = vpop.f32.mrf.mxu0  ;;  %v1075_v62 = vpop.f32.mrf.mxu1 }
 0x34a   : > { %v684_v5 = vadd.f32 %v1075_v62, %v1067_v61 }
 0x34b   : > { %v609_v63 = vpop.f32.mrf.mxu0  ;;  %v675_v0 = vpop.f32.mrf.mxu1 }
 0x34c   : > { %v676_v1 = vadd.f32 %v675_v0, %v609_v63  ;;  %v695_v11 = vadd.f32 %v975_v2, %v684_v5 }
 0x34d   : > { %v1068_v3 = vpop.f32.mrf.mxu0  ;;  %v1076_v4 = vpop.f32.mrf.mxu1 }
 0x34e   : > { %v693_v6 = vadd.f32 %v975_v2, %v676_v1 }
 0x34f   : > { %v612_v7 = vpop.f32.mrf.mxu0  ;;  %v678_v8 = vpop.f32.mrf.mxu1 }
 0x350   : > { %v696_v9 = vpack.c.bf16 %v693_v6, %v693_v6  ;;  %v679_v10 = vadd.f32 %v678_v8, %v612_v7 }
 0x352   : > { %v694_v12 = vadd.f32 %v975_v2, %v679_v10  ;;  %1082 = vmatmul.mubr.msk.bf16.vlgmr.msra.gmra.mxu0 %vm233_vm0, %v696_v9 }
 0x353   : > { %1097 = vmatprep.mubr.msk.bf16.mxu0 %vm1144_vm4, %v1143_v57  ;;  %1094 = vmatpush3.bf16.msra.mxu0 %v1133_v14 }
 0x354   : > { %v697_v13 = vpack.c.bf16 %v695_v11, %v694_v12  ;;  %1095 = vmatprep.subr.bf16.mxu0 %v1143_v57 }
 0x356   : > { %1090 = vmatmul.mubr.msk.bf16.vlgmr.msra.gmra.mxu1 %vm233_vm0, %v697_v13 }
 0x357   : > { %1096 = vmatpush3.bf16.msra.mxu0 %v1134_v15 }
 0x412   : > { %v747_v16 = vpop.f32.mrf.mxu0 }
 0x414   : > { %v1083_v17 = vpop.f32.mrf.mxu0 }
 0x416   : > { %v750_v18 = vpop.f32.mrf.mxu0  ;;  %v802_v19 = vpop.f32.mrf.mxu1 }
 0x417   : > { %v809_v20 = vadd.f32 %v802_v19, %v747_v16 }
 0x418   : > { %v1084_v22 = vpop.f32.mrf.mxu0  ;;  %v1091_v23 = vpop.f32.mrf.mxu1 }
 0x419   : > { %v815_v25 = vadd.f32 %v982_v21, %v809_v20 }
 0x41a   : > { %v805_v24 = vpop.f32.mrf.mxu1 }
 0x41b   : > { %v810_v26 = vadd.f32 %v805_v24, %v747_v16  ;;  %v817_v29 = vmax.f32 %v815_v25, 0.0 }
 0x41c   : > { %v1092_v27 = vpop.f32.mrf.mxu1 }
 0x41d   : > { %v816_v28 = vadd.f32 %v982_v21, %v810_v26 }
 0x41f   : > { %v818_v30 = vmax.f32 %v816_v28, 0.0 }
 0x421   : > { %v819_v31 = vpack.c.bf16 %v818_v30, %v817_v29 }
 0x423   : > { %1098 = vmatmul.mubr.msk.bf16.vlgmr.msra.gmra.mxu0 %vm233_vm0, %v819_v31 }
 0x4e3   : > { %v873_v33 = vpop.f32.mrf.mxu0 }
 0x4e4   : > { %v874_v34 = vadd.f32 %v983_v32, %v873_v33 }
 0x4e5   : > { %v1099_v35 = vpop.f32.mrf.mxu0 }
 0x4e6   : > { %880 = vst [vmem:[%s170_s5] sm:$0xff] %v874_v34 }
 0x4e7   : > { %v876_v36 = vpop.f32.mrf.mxu0 }
 0x4e8   : > { %v877_v37 = vadd.f32 %v983_v32, %v876_v36 }
 0x4e9   : > { %v1100_v38 = vpop.f32.mrf.mxu0 }
 0x4ea   : > { %881 = vst [vmem:[%s170_s5 + $0x8] sm:$0xff] %v877_v37 }
 0x4eb PF: > { %s13_s12 = sadd.s32 1, %s1141_s12  }
 0x4ec   : > { %p10_p4 = scmp.ge.s32.totalorder %s13_s12, 6  }
 0x4ee   :  { %12 = sbr.rel (!%p10_p4) target bundleno = 1 (0x1), region = 62 }

</bundles_post_ra>
